<compile_context>
chip_gen: v6e
topology: v6e:2x2x1
jax: 0.10.0
libtpu: 0.0.40
codegen_flags: <defaults>
</compile_context>

<pallas_src>
import functools

import jax
import jax.numpy as jnp
from jax.experimental import pallas as pl
from jax.experimental.pallas import tpu as pltpu


def _round_up(n, m):
    return ((n + m - 1) // m) * m


def _vmem_capacity_bytes():
    """Per-TensorCore VMEM capacity; falls back to the v7x floor (64 MiB)."""
    try:
        return int(pltpu.get_tpu_info().vmem_capacity_bytes)
    except Exception:
        return 64 * 1024 * 1024


def _has_wide_mxu():
    """True on 256-wide-MXU chips (v6e / v7x); False on v5e/older or unknown."""
    try:
        kind = jax.devices()[0].device_kind.lower()
    except Exception:
        return False
    return ("v6" in kind) or ("v7" in kind) or ("7x" in kind)


def club_kernel(x_ref, y_ref, w1_ref, b1_ref, w2_ref, b2_ref, stats_ref, out_ref,
                *, lv_off, n_valid, tile_n):
    """One N-tile of the CLUB forward pass, reduced to a single partial sum.

    x_ref   : [TN, x_dim]          row tile of x_samples
    y_ref   : [TN, y_dim]          row tile of y_samples
    w1_ref  : [x_dim, 2*hh]        fused first layer   [w1_mu | w1_logvar]
    b1_ref  : [1, 2*hh]
    w2_ref  : [2*hh, lv_off+y_dim] block-diag second layer (mu cols 0..y_dim,
                                   logvar cols lv_off..lv_off+y_dim)
    b2_ref  : [1, lv_off+y_dim]
    stats_ref : [2, y_dim]         row 0 = mean(y), row 1 = mean(y^2)  (full-N)
    out_ref : [8, 128]             tile partial sum broadcast into one dense block
    """
    x = x_ref[...]
    y = y_ref[...]
    y_dim = y.shape[-1]

    # Fused two-branch MLP: one wide matmul per layer instead of two narrow ones.
    h = jnp.maximum(
        jnp.dot(x, w1_ref[...], preferred_element_type=jnp.float32) + b1_ref[...],
        0.0)                                                        # [TN, 2*hh]
    z = jnp.dot(h, w2_ref[...], preferred_element_type=jnp.float32) + b2_ref[...]
    mu = z[:, :y_dim]                                               # [TN, y_dim]
    logvar = jnp.tanh(z[:, lv_off:lv_off + y_dim])                  # [TN, y_dim]
    inv_var = jnp.exp(-logvar)                                      # EUP

    stats = stats_ref[...]
    y_mean = stats[0:1, :]                                          # [1, y_dim]
    y_sq_mean = stats[1:2, :]                                       # [1, y_dim]

    # positive - negative, algebraically fused (mu^2 cancels):
    #   = 0.5 * exp(-logvar) * (E[y^2] - y^2 + 2*mu*(y - E[y]))
    per_elem = 0.5 * inv_var * (
        y_sq_mean - y * y + 2.0 * mu * (y - y_mean))                # [TN, y_dim]
    per_sample = jnp.sum(per_elem, axis=-1, keepdims=True)          # [TN, 1]

    # Mask zero-padded rows (they would otherwise pollute the tile partial sum).
    row_ids = jax.lax.broadcasted_iota(jnp.int32, per_sample.shape, 0)
    valid = (row_ids + pl.program_id(0) * tile_n) < n_valid
    per_sample = jnp.where(valid, per_sample, 0.0)

    partial = jnp.sum(per_sample, axis=0, keepdims=True)            # [1, 1]
    out_ref[...] = jnp.broadcast_to(partial, (8, 128))              # one dense vst


def club_forward(x, y, params, *, block_n=4096):
    """CLUB forward (upper-bound MI estimate); matches PyTorch CLUB.forward()."""
    (w1m, b1m, w2m, b2m, w1v, b1v, w2v, b2v) = params
    n, x_dim = x.shape
    y_dim = y.shape[1]
    hh = w1m.shape[1]

    # ---- layer-2 layout: vreg-aligned mu|logvar split on 256-wide MXUs ---------
    wide_mxu = _has_wide_mxu()
    lv_off = _round_up(y_dim, 128) if wide_mxu else y_dim
    w2_cols = lv_off + y_dim

    # ---- parameter fusion: wider, better-shaped MXU matmuls --------------------
    w1 = jnp.concatenate([w1m, w1v], axis=1)                    # [x_dim, 2*hh]
    b1 = jnp.concatenate([b1m, b1v], axis=1)                    # [1, 2*hh]
    w2 = jnp.zeros((2 * hh, w2_cols), jnp.float32)
    w2 = w2.at[:hh, :y_dim].set(w2m).at[hh:, lv_off:].set(w2v)  # block-diagonal
    b2 = jnp.zeros((1, w2_cols), jnp.float32)
    b2 = b2.at[:, :y_dim].set(b2m).at[:, lv_off:].set(b2v)

    # ---- full-N y statistics (computed BEFORE any padding) ---------------------
    stats = jnp.stack([jnp.mean(y, axis=0), jnp.mean(y * y, axis=0)], axis=0)
    stats = stats.astype(jnp.float32)                            # [2, y_dim]

    # ---- generation-aware N-tile sizing ----------------------------------------
    vmem_cap = _vmem_capacity_bytes()
    tile_budget = vmem_cap // 4                       # leave room for pipelining/temps
    per_row_bytes = 4 * (2 * (x_dim + y_dim)          # x,y tiles, double-buffered
                         + 2 * hh + w2_cols           # h, z intermediates
                         + 4 * y_dim + 8)             # mu/logvar/per_elem/misc
    tn_cap = max(256, min(8192, (tile_budget // per_row_bytes) // 8 * 8))
    tn = min(_round_up(max(block_n, 8), 8), tn_cap, _round_up(n, 8))
    if n >= 8 * 1024:
        # keep the "parallel" grid >= ~8 steps so both TCs stay busy on megacore
        tn = min(tn, _round_up(-(-n // 8), 8))
    tn = max(8, _round_up(tn, 8))

    n_pad = _round_up(n, tn)
    if n_pad != n:
        # zero padding: padded rows are masked inside the kernel
        x = jnp.pad(x, ((0, n_pad - n), (0, 0)))
        y = jnp.pad(y, ((0, n_pad - n), (0, 0)))
    n_blocks = n_pad // tn

    vmem_limit = int(min(vmem_cap * 3 // 4, 96 * 1024 * 1024))

    flops = 2 * n_pad * (x_dim * 2 * hh + 2 * hh * w2_cols) + 12 * n_pad * y_dim
    bytes_accessed = 4 * (n_pad * (x_dim + y_dim) + w1.size + b1.size
                          + w2.size + b2.size + stats.size + n_blocks * 8 * 128)
    cost = pl.CostEstimate(flops=flops,
                           transcendentals=2 * n_pad * y_dim,
                           bytes_accessed=bytes_accessed)

    kernel = functools.partial(club_kernel, lv_off=lv_off, n_valid=n, tile_n=tn)

    const = lambda i: (0, 0)   # resident blocks: DMA'd once, never re-fetched
    partials = pl.pallas_call(
        kernel,
        out_shape=jax.ShapeDtypeStruct((8 * n_blocks, 128), jnp.float32),
        grid=(n_blocks,),
        in_specs=[
            pl.BlockSpec((tn, x_dim), lambda i: (i, 0)),        # x tile
            pl.BlockSpec((tn, y_dim), lambda i: (i, 0)),        # y tile
            pl.BlockSpec((x_dim, 2 * hh), const),               # w1 (resident)
            pl.BlockSpec((1, 2 * hh), const),                   # b1
            pl.BlockSpec((2 * hh, w2_cols), const),             # w2
            pl.BlockSpec((1, w2_cols), const),                  # b2
            pl.BlockSpec((2, y_dim), const),                    # [mean(y); mean(y^2)]
        ],
        out_specs=pl.BlockSpec((8, 128), lambda i: (i, 0)),
        compiler_params=pltpu.CompilerParams(
            dimension_semantics=("parallel",),                  # megacore-shardable
            vmem_limit_bytes=vmem_limit),
        cost_estimate=cost,
    )(x, y, w1, b1, w2, b2, stats)

    # Each (8,128) block holds one tile's partial sum broadcast; pick one lane each.
    return jnp.sum(partials[::8, 0]) / n


def club_forward_ref(x, y, params):
    """Pure-JAX reference matching the PyTorch forward() literally (O(N^2) form)."""
    (w1m, b1m, w2m, b2m, w1v, b1v, w2v, b2v) = params
    h_mu = jnp.maximum(x @ w1m + b1m, 0.0)
    mu = h_mu @ w2m + b2m
    h_lv = jnp.maximum(x @ w1v + b1v, 0.0)
    logvar = jnp.tanh(h_lv @ w2v + b2v)
    positive = -(mu - y) ** 2 / 2.0 / jnp.exp(logvar)
    pred1 = mu[:, None, :]                 # [N, 1, D]
    y1 = y[None, :, :]                     # [1, N, D]
    negative = -((y1 - pred1) ** 2).mean(axis=1) / 2.0 / jnp.exp(logvar)
    return (positive.sum(axis=-1) - negative.sum(axis=-1)).mean()


def init_params(key, x_dim, y_dim, hidden_size):
    h = hidden_size // 2
    ks = jax.random.split(key, 8)
    scale = 0.1
    w1m = scale * jax.random.normal(ks[0], (x_dim, h), jnp.float32)
    b1m = scale * jax.random.normal(ks[1], (1, h), jnp.float32)
    w2m = scale * jax.random.normal(ks[2], (h, y_dim), jnp.float32)
    b2m = scale * jax.random.normal(ks[3], (1, y_dim), jnp.float32)
    w1v = scale * jax.random.normal(ks[4], (x_dim, h), jnp.float32)
    b1v = scale * jax.random.normal(ks[5], (1, h), jnp.float32)
    w2v = scale * jax.random.normal(ks[6], (h, y_dim), jnp.float32)
    b2v = scale * jax.random.normal(ks[7], (1, y_dim), jnp.float32)
    return (w1m, b1m, w2m, b2m, w1v, b1v, w2v, b2v)


if __name__ == "__main__":
    x_dim, y_dim, hidden_size = 32, 16, 64
    key = jax.random.PRNGKey(0)
    kx, ky, kp = jax.random.split(key, 3)
    params = init_params(kp, x_dim, y_dim, hidden_size)

    # ---- small single-tile case -------------------------------------------------
    N = 8
    x = jax.random.normal(kx, (N, x_dim), jnp.float32)
    y = jax.random.normal(ky, (N, y_dim), jnp.float32)
    out = jax.block_until_ready(club_forward(x, y, params))
    ref = jax.block_until_ready(club_forward_ref(x, y, params))
    assert jnp.allclose(out, ref, rtol=1e-4, atol=1e-5), (out, ref)

    # ---- multi-tile case: grid > 1, ragged last tile, in-kernel row masking -----
    N2 = 100
    x2 = jax.random.normal(jax.random.fold_in(kx, 1), (N2, x_dim), jnp.float32)
    y2 = jax.random.normal(jax.random.fold_in(ky, 1), (N2, y_dim), jnp.float32)
    out2 = jax.block_until_ready(club_forward(x2, y2, params, block_n=32))
    ref2 = jax.block_until_ready(club_forward_ref(x2, y2, params))
    assert jnp.allclose(out2, ref2, rtol=1e-3, atol=1e-4), (out2, ref2)

    # ---- same data through the default (large-tile) path ------------------------
    out3 = jax.block_until_ready(club_forward(x2, y2, params))
    assert jnp.allclose(out3, ref2, rtol=1e-3, atol=1e-4), (out3, ref2)

    print("KERNEL_OK")
</pallas_src>

<mosaic_0001>
module attributes {stable_mosaic.version = 11 : i64} {
  func.func @club_kernel(%arg0: i32, %arg1: memref<8x32xf32, #tpu.memory_space<vmem>>, %arg2: memref<8x16xf32, #tpu.memory_space<vmem>>, %arg3: memref<32x64xf32, #tpu.memory_space<vmem>>, %arg4: memref<1x64xf32, #tpu.memory_space<vmem>>, %arg5: memref<64x32xf32, #tpu.memory_space<vmem>>, %arg6: memref<1x32xf32, #tpu.memory_space<vmem>>, %arg7: memref<2x16xf32, #tpu.memory_space<vmem>>, %arg8: memref<8x128xf32, #tpu.memory_space<vmem>>) attributes {dimension_semantics = [#tpu.dimension_semantics<parallel>], iteration_bounds = array<i64: 1>, scalar_prefetch = 0 : i64, scratch_operands = 0 : i64, tpu.core_type = #tpu.core_type<tc>, window_params = [{transform_indices = @transform_0, window_bounds = array<i64: 8, 32>}, {transform_indices = @transform_1, window_bounds = array<i64: 8, 16>}, {pipeline_mode = #tpu.pipeline_mode<synchronous>, transform_indices = @transform_2, window_bounds = array<i64: 32, 64>}, {pipeline_mode = #tpu.pipeline_mode<synchronous>, transform_indices = @transform_3, window_bounds = array<i64: 1, 64>}, {pipeline_mode = #tpu.pipeline_mode<synchronous>, transform_indices = @transform_4, window_bounds = array<i64: 64, 32>}, {pipeline_mode = #tpu.pipeline_mode<synchronous>, transform_indices = @transform_5, window_bounds = array<i64: 1, 32>}, {pipeline_mode = #tpu.pipeline_mode<synchronous>, transform_indices = @transform_6, window_bounds = array<i64: 2, 16>}, {transform_indices = @transform_7, window_bounds = array<i64: 8, 128>}]} {
    %c0 = arith.constant 0 : index
    %c0_0 = arith.constant 0 : index
    %0 = vector.load %arg1[%c0, %c0_0] : memref<8x32xf32, #tpu.memory_space<vmem>>, vector<8x32xf32>
    %c0_1 = arith.constant 0 : index
    %c0_2 = arith.constant 0 : index
    %1 = vector.load %arg2[%c0_1, %c0_2] : memref<8x16xf32, #tpu.memory_space<vmem>>, vector<8x16xf32>
    %c0_3 = arith.constant 0 : index
    %c0_4 = arith.constant 0 : index
    %2 = vector.load %arg3[%c0_3, %c0_4] : memref<32x64xf32, #tpu.memory_space<vmem>>, vector<32x64xf32>
    %cst = arith.constant dense<0.000000e+00> : vector<8x64xf32>
    %3 = tpu.matmul %0, %2, %cst {dimension_numbers = #tpu.dot_dimension_numbers<[1], [0], [0], [1], [0, 0, 1, 1], [], []>} : vector<8x32xf32>, vector<32x64xf32>, vector<8x64xf32> -> vector<8x64xf32>
    %c0_5 = arith.constant 0 : index
    %c0_6 = arith.constant 0 : index
    %4 = vector.load %arg4[%c0_5, %c0_6] : memref<1x64xf32, #tpu.memory_space<vmem>>, vector<1x64xf32>
    %5 = vector.broadcast %4 : vector<1x64xf32> to vector<8x64xf32>
    %6 = arith.addf %3, %5 : vector<8x64xf32>
    %cst_7 = arith.constant 0.000000e+00 : f32
    %7 = vector.broadcast %cst_7 : f32 to vector<8x64xf32>
    %8 = arith.maximumf %6, %7 : vector<8x64xf32>
    %c0_8 = arith.constant 0 : index
    %c0_9 = arith.constant 0 : index
    %9 = vector.load %arg5[%c0_8, %c0_9] : memref<64x32xf32, #tpu.memory_space<vmem>>, vector<64x32xf32>
    %cst_10 = arith.constant dense<0.000000e+00> : vector<8x32xf32>
    %10 = tpu.matmul %8, %9, %cst_10 {dimension_numbers = #tpu.dot_dimension_numbers<[1], [0], [0], [1], [0, 0, 1, 1], [], []>} : vector<8x64xf32>, vector<64x32xf32>, vector<8x32xf32> -> vector<8x32xf32>
    %c0_11 = arith.constant 0 : index
    %c0_12 = arith.constant 0 : index
    %11 = vector.load %arg6[%c0_11, %c0_12] : memref<1x32xf32, #tpu.memory_space<vmem>>, vector<1x32xf32>
    %12 = vector.broadcast %11 : vector<1x32xf32> to vector<8x32xf32>
    %13 = arith.addf %10, %12 : vector<8x32xf32>
    %14 = vector.extract_strided_slice %13 {offsets = [0, 0], sizes = [8, 16], strides = [1, 1]} : vector<8x32xf32> to vector<8x16xf32>
    %15 = vector.extract_strided_slice %13 {offsets = [0, 16], sizes = [8, 16], strides = [1, 1]} : vector<8x32xf32> to vector<8x16xf32>
    %16 = math.tanh %15 : vector<8x16xf32>
    %cst_13 = arith.constant 0.000000e+00 : f32
    %17 = vector.broadcast %cst_13 : f32 to vector<8x16xf32>
    %18 = arith.subf %17, %16 : vector<8x16xf32>
    %19 = math.exp %18 : vector<8x16xf32>
    %c0_14 = arith.constant 0 : index
    %c0_15 = arith.constant 0 : index
    %20 = vector.load %arg7[%c0_14, %c0_15] : memref<2x16xf32, #tpu.memory_space<vmem>>, vector<2x16xf32>
    %21 = vector.extract_strided_slice %20 {offsets = [0, 0], sizes = [1, 16], strides = [1, 1]} : vector<2x16xf32> to vector<1x16xf32>
    %22 = vector.extract_strided_slice %20 {offsets = [1, 0], sizes = [1, 16], strides = [1, 1]} : vector<2x16xf32> to vector<1x16xf32>
    %cst_16 = arith.constant 5.000000e-01 : f32
    %23 = vector.broadcast %cst_16 : f32 to vector<8x16xf32>
    %24 = arith.mulf %23, %19 : vector<8x16xf32>
    %25 = arith.mulf %1, %1 : vector<8x16xf32>
    %26 = vector.broadcast %22 : vector<1x16xf32> to vector<8x16xf32>
    %27 = arith.subf %26, %25 : vector<8x16xf32>
    %cst_17 = arith.constant 2.000000e+00 : f32
    %28 = vector.broadcast %cst_17 : f32 to vector<8x16xf32>
    %29 = arith.mulf %28, %14 : vector<8x16xf32>
    %30 = vector.broadcast %21 : vector<1x16xf32> to vector<8x16xf32>
    %31 = arith.subf %1, %30 : vector<8x16xf32>
    %32 = arith.mulf %29, %31 : vector<8x16xf32>
    %33 = arith.addf %27, %32 : vector<8x16xf32>
    %34 = arith.mulf %24, %33 : vector<8x16xf32>
    %cst_18 = arith.constant dense<0.000000e+00> : vector<8xf32>
    %35 = vector.multi_reduction <add>, %34, %cst_18 [1] : vector<8x16xf32> to vector<8xf32>
    %36 = vector.shape_cast %35 : vector<8xf32> to vector<8x1xf32>
    %37 = tpu.iota {dimensions = array<i32: 0>} : vector<8x1xi32>
    %c8_i32 = arith.constant 8 : i32
    %38 = arith.muli %arg0, %c8_i32 : i32
    %39 = vector.broadcast %38 : i32 to vector<8x1xi32>
    %40 = arith.addi %37, %39 : vector<8x1xi32>
    %c8_i32_19 = arith.constant 8 : i32
    %41 = vector.broadcast %c8_i32_19 : i32 to vector<8x1xi32>
    %42 = arith.cmpi slt, %40, %41 : vector<8x1xi32>
    %cst_20 = arith.constant 0.000000e+00 : f32
    %43 = vector.broadcast %cst_20 : f32 to vector<8x1xf32>
    %44 = arith.select %42, %36, %43 : vector<8x1xi1>, vector<8x1xf32>
    %cst_21 = arith.constant dense<0.000000e+00> : vector<1xf32>
    %45 = vector.multi_reduction <add>, %44, %cst_21 [0] : vector<8x1xf32> to vector<1xf32>
    %46 = vector.shape_cast %45 : vector<1xf32> to vector<1x1xf32>
    %47 = vector.shape_cast %46 : vector<1x1xf32> to vector<1x1xf32>
    %48 = vector.broadcast %47 : vector<1x1xf32> to vector<8x128xf32>
    %c0_22 = arith.constant 0 : index
    %c0_23 = arith.constant 0 : index
    %49 = vector.load %arg8[%c0_22, %c0_23] : memref<8x128xf32, #tpu.memory_space<vmem>>, vector<8x128xf32>
    tpu.vector_store %arg8[%c0_22, %c0_23], %48 {strides = array<i32>} : memref<8x128xf32, #tpu.memory_space<vmem>>, vector<8x128xf32>,
    return
  }
  func.func @transform_0(%arg0: i32) -> (i32, i32) {
    %c0_i32 = arith.constant 0 : i32
    %c0_i32_0 = arith.constant 0 : i32
    return %arg0, %c0_i32 : i32, i32
  }
  func.func @transform_1(%arg0: i32) -> (i32, i32) {
    %c0_i32 = arith.constant 0 : i32
    %c0_i32_0 = arith.constant 0 : i32
    return %arg0, %c0_i32 : i32, i32
  }
  func.func @transform_2(%arg0: i32) -> (i32, i32) {
    %c0_i32 = arith.constant 0 : i32
    %c0_i32_0 = arith.constant 0 : i32
    %c0_i32_1 = arith.constant 0 : i32
    return %c0_i32, %c0_i32_0 : i32, i32
  }
  func.func @transform_3(%arg0: i32) -> (i32, i32) {
    %c0_i32 = arith.constant 0 : i32
    %c0_i32_0 = arith.constant 0 : i32
    %c0_i32_1 = arith.constant 0 : i32
    return %c0_i32, %c0_i32_0 : i32, i32
  }
  func.func @transform_4(%arg0: i32) -> (i32, i32) {
    %c0_i32 = arith.constant 0 : i32
    %c0_i32_0 = arith.constant 0 : i32
    %c0_i32_1 = arith.constant 0 : i32
    return %c0_i32, %c0_i32_0 : i32, i32
  }
  func.func @transform_5(%arg0: i32) -> (i32, i32) {
    %c0_i32 = arith.constant 0 : i32
    %c0_i32_0 = arith.constant 0 : i32
    %c0_i32_1 = arith.constant 0 : i32
    return %c0_i32, %c0_i32_0 : i32, i32
  }
  func.func @transform_6(%arg0: i32) -> (i32, i32) {
    %c0_i32 = arith.constant 0 : i32
    %c0_i32_0 = arith.constant 0 : i32
    %c0_i32_1 = arith.constant 0 : i32
    return %c0_i32, %c0_i32_0 : i32, i32
  }
  func.func @transform_7(%arg0: i32) -> (i32, i32) {
    %c0_i32 = arith.constant 0 : i32
    %c0_i32_0 = arith.constant 0 : i32
    return %arg0, %c0_i32 : i32, i32
  }
}

</mosaic_0001>

<bundles_post_ra>
// kernel: tpu_custom_call.1
= control target key start
LH: loop header
LB: loop body
LE: loop exit
PB: predicated region body
PF: predicated region fallthrough
CT: control target
= control target key end

     0   :  { %v344_v1 = vmov 0.0   ;;  %vm345_vm0 = vmmov 0   ;;  %s445_s0 = inlined_call_operand.vmem [shape: f32[8,32], index: 0, kind: input, shape index: {}]   ;;  %s446_s1 = inlined_call_operand.vmem [shape: f32[8,16], index: 1, kind: input, shape index: {}]   ;;  %s447_s2 = inlined_call_operand.vmem [shape: f32[32,64], index: 2, kind: input, shape index: {}]   ;;  %s448_s3 = inlined_call_operand.vmem [shape: f32[1,64], index: 3, kind: input, shape index: {}]   ;;  %s449_s4 = inlined_call_operand.vmem [shape: f32[64,32], index: 4, kind: input, shape index: {}]   ;;  %s450_s5 = inlined_call_operand.vmem [shape: f32[1,32], index: 5, kind: input, shape index: {}]   ;;  %s451_s6 = inlined_call_operand.vmem [shape: f32[2,16], index: 6, kind: input, shape index: {}]   ;;  %s452_s7 = inlined_call_operand.hbm [shape: f32[8,128], index: 7, kind: output, shape index: {}]  }
   0x1   :  { %v32_v0 = vld [vmem:[%s447_s2 + $0x18] sm:$0xff]  ;;  %283 = vmatprep.subr.mxu0 %v344_v1  ;;  %v31_v2 = vld [vmem:[%s447_s2 + $0x10] sm:$0xff]  ;;  %291 = vmatprep.mubr.msk.f32.mxu0 %vm345_vm0, %v344_v1  ;;  %v30_v5 = vld [vmem:[%s447_s2 + $0x8] sm:$0xff] }
   0x2   :  { %v122_v3 = vld [vmem:[%s449_s4 + $0x38] sm:$0xff]  ;;  %284 = vmatpush3.msra.mxu0 %v32_v0  ;;  %294 = vmatprep.subr.mxu1 %v344_v1  ;;  %v121_v4 = vld [vmem:[%s449_s4 + $0x30] sm:$0xff] }
   0x3   :  { %285 = vmatprep.subr.mxu0 %v344_v1  ;;  %295 = vmatpush3.msra.mxu1 %v122_v3 }
   0x4   :  { %12 = vsyncpa [#allocation3], 0  ;;  %286 = vmatpush3.msra.mxu0 %v31_v2  ;;  %296 = vmatprep.subr.mxu1 %v344_v1  ;;  %v120_v6 = vld [vmem:[%s449_s4 + $0x28] sm:$0xff]  ;;  %v29_v7 = vld [vmem:[%s447_s2] sm:$0xff]  ;;  %vm40_vm1 = vcmask 261120   ;;  %vm130_vm2 = vcmask 523264   ;;  %v211_v19 = vlaneseq }
   0x5   :  { %287 = vmatprep.subr.mxu0 %v344_v1  ;;  %297 = vmatpush3.msra.mxu1 %v121_v4  ;;  %v27_v8 = vld [vmem:[%s445_s0] sm:$0xff]  ;;  %v118_v10 = vld [vmem:[%s449_s4 + $0x18] sm:$0xff]  ;;  %v117_v11 = vld [vmem:[%s449_s4 + $0x10] sm:$0xff]  ;;  %vm233_vm3 = vcmask 130048  }
   0x6   :  { %288 = vmatpush3.msra.mxu0 %v30_v5  ;;  %298 = vmatprep.subr.mxu1 %v344_v1  ;;  %v119_v9 = vld [vmem:[%s449_s4 + $0x20] sm:$0xff]  ;;  %v116_v12 = vld [vmem:[%s449_s4 + $0x8] sm:$0xff]  ;;  %v212_v20 = vshrl.u32 %v211_v19, 7 }
   0x7   :  { %289 = vmatprep.subr.mxu0 %v344_v1  ;;  %299 = vmatpush3.msra.mxu1 %v120_v6  ;;  %v115_v13 = vld [vmem:[%s449_s4] sm:$0xff] }
   0x8   :  { %290 = vmatpush3.msra.mxu0 %v29_v7  ;;  %300 = vmatprep.subr.mxu1 %v344_v1  ;;  %v265_v14 = vld [vmem:[%s448_s3] ss:$0 sm:$0xff]  ;;  %v219_v21 = vsub.s32 0, %v212_v20  ;;  %v213_v23 = vsub.s32 1, %v212_v20 }
   0x9   :  { %292 = vmatmul.mubr.msk.f32.vlgmr.msra.gmra.mxu0 %vm40_vm1, %v27_v8  ;;  %301 = vmatpush3.msra.mxu1 %v119_v9  ;;  %v208_v22 = vld [vmem:[%s451_s6] sm:$0x3]  ;;  %s346_s6 = smov 16  }
   0xa   :  { %302 = vmatprep.subr.mxu1 %v344_v1  ;;  %310 = vmatprep.mubr.msk.f32.mxu1 %vm345_vm0, %v344_v1  ;;  %v28_v24 = vld [vmem:[%s446_s1] sm:$0xff]  ;;  %v220_v25 = vrot.slane %v208_v22, %v219_v21  ;;  %v214_v28 = vrot.slane %v208_v22, %v213_v23  ;;  %s347_s1 = smov 112  }
   0xb   :  { %303 = vmatpush3.msra.mxu1 %v118_v10  ;;  %v267_v26 = vld [vmem:[%s450_s5] ss:$0 sm:$0xff]  ;;  %v210_v27 = vmul.f32 %v28_v24, %v28_v24  ;;  %s348_s5 = smov [#allocation2]  }
   0xc   :  { %304 = vmatprep.subr.mxu1 %v344_v1  ;;  %v221_v31 = vsub.f32 %v28_v24, %v220_v25  ;;  %s257_s8 = sshll.u32 %s348_s5, 4  ;;  %s258_s8 = int_to_ptr.vmem [resolvable:$true] %s257_s8 }
   0xd   :  { %305 = vmatpush3.msra.mxu1 %v117_v11  ;;  %v215_v34 = vsub.f32 %v214_v28, %v210_v27  ;;  %s322_s9 = scalar_lea.vmem %s258_s8, 128  ;;  %p327_p1 = scmp.lt.s32.totalorder %s258_s8, %s258_s8 }
   0xe   :  { %306 = vmatprep.subr.mxu1 %v344_v1  ;;  %p323_p0 = scmp.ne.s32.totalorder %s258_s8, %s322_s9  ;;  %p328_p2 = scmp.lt.s32.totalorder %s322_s9, %s322_s9 }
   0xf   :  { %307 = vmatpush3.msra.mxu1 %v116_v12 }
  0x10   :  { %308 = vmatprep.subr.mxu1 %v344_v1  ;;  %p329_p3 = por %p328_p2, %p327_p1 }
  0x11   :  { %309 = vmatpush3.msra.mxu1 %v115_v13 }
  0x12   :  { %p330_p4 = pnand %p329_p3, %p323_p0 }
  0xc9   :  { %v110_v15 = vpop.f32.mrf.mxu0 }
  0xca   :  { %v111_v16 = vadd.f32 %v265_v14, %v110_v15 }
  0xcb   :  { %v293_v17 = vpop.f32.mrf.mxu0 }
  0xcc   :  { %v114_v18 = vmax.f32 %v111_v16, 0.0 }
  0xce   :  { %311 = vmatmul.mubr.msk.f32.vlgmr.msra.gmra.mxu1 %vm130_vm2, %v114_v18 }
 0x18e   :  { %v200_v29 = vpop.f32.mrf.mxu1 }
 0x18f   :  { %v201_v30 = vadd.f32 %v267_v26, %v200_v29 }
 0x190   :  { %v312_v32 = vpop.f32.mrf.mxu1 }
 0x191   :  { %v216_v33 = vmul.f32 2.0, %v201_v30  ;;  %318 = vtanh.f32 %v201_v30 }
 0x193   :  { %v222_v35 = vmul.f32 %v221_v31, %v216_v33 }
 0x195   :  { %v223_v36 = vadd.f32 %v222_v35, %v215_v34 }
 0x197   :  { %225 = vrot.lane.b32.xlu0 %v223_v36, %s346_s6 }
 0x19e   :  { %v319_v37 = vpop.eup %318 }
 0x19f   :  { %v205_v38 = vsub.f32 0.0, %v319_v37 }
 0x1a1   :  { %v206_v39 = vmul.f32 1.442695, %v205_v38 }
 0x1a3   :  { %320 = vpow2.f32 %v206_v39 }
 0x1b0   :  { %v321_v40 = vpop.eup %320 }
 0x1b1   :  { %v209_v41 = vmul.f32 0.5, %v321_v40 }
 0x209   :  { %v226_v42 = vpop.permute.xlu0 %225 }
 0x20a   :  { %v228_v43 = vmul.f32 %v226_v42, %v209_v41 }
 0x20c   :  { %230 = vrot.lane.b32.xlu0 %v228_v43, %s347_s1 }
 0x27e   :  { %v231_v44 = vpop.permute.xlu0 %230 }
 0x27f   :  { %v234_v45 = vsel %vm233_vm3, %v231_v44, 0.0 }
 0x280   :  { %235 = vadd.xlane.f32.xlu1 %v234_v45 }
 0x309   :  { %v236_v46 = vpop.xlane.xlu1 %235 }
 0x30a   :  { %v244_v47 = vrot.slane %v236_v46, 4 }
 0x30c   :  { %v245_v48 = vadd.f32 %v244_v47, %v236_v46 }
 0x30e   :  { %v246_v49 = vrot.slane %v245_v48, 2 }
 0x310   :  { %v247_v50 = vadd.f32 %v246_v49, %v245_v48 }
 0x312   :  { %v248_v51 = vrot.slane %v247_v50, 1 }
 0x314   :  { %v249_v52 = vadd.f32 %v248_v51, %v247_v50 }
 0x316   :  { %250 = vst [vmem:[#allocation2] sm:$0xff] %v249_v52 }
 0x317   :  { %333 = shalt.err (!%p330_p4)
}
 0x318   :  { %260 = dma.vmem_to_hbm [thread:$0]  %s258_s8, 128, %s452_s7, [#allocation3]  }
 0x319   :  { %342 = dma.done.wait [#allocation3], 128  }
 0x31a   :  { %343 = vsyncadd [#allocation3], 4294967168 }
 0x31b   :  { %264 = vsyncpa [#allocation3], 1 }

</bundles_post_ra>
